<compile_context>
chip_gen: v7x
topology: tpu7x:2x2x1
jax: 0.10.0
libtpu: 0.0.40
codegen_flags: <defaults>
</compile_context>

<pallas_src>
import functools

import jax
import jax.numpy as jnp
from jax.experimental import pallas as pl
from jax.experimental.pallas import tpu as pltpu


def _round_up(x, m):
    return ((x + m - 1) // m) * m


def _smooth_ce_kernel(logits_ref, targets_ref, out_ref, *,
                      epsilon, num_classes, batch, block_b):
    """Per-batch-tile partial sum of label-smoothed cross entropy.

    logits_ref : (TB, C)     caller dtype (bf16/f32); partial trailing block
                             may contain undefined rows (masked below).
    targets_ref: (TB, 1)     int32
    out_ref    : (1, 8, 128) float32 partial sum (splat over the tile)
    """
    i = pl.program_id(0)
    x = logits_ref[...].astype(jnp.float32)            # (TB, C)
    tgt = targets_ref[...]                             # (TB, 1)
    tb, c = x.shape

    # Numerically stable softmax pieces (shifted <= 0, exp never overflows).
    m = jnp.max(x, axis=1, keepdims=True)              # (TB, 1)
    shifted = x - m
    e = jnp.exp(shifted)

    # Fused target + smoothing weights: w_j = eps/C + (1-eps)*[j == tgt],
    # sum_j w_j == 1, so  row_loss = lse - sum_j w_j * shifted_j.
    col = jax.lax.broadcasted_iota(jnp.int32, (tb, c), 1)
    w_hit = jnp.float32(1.0 - epsilon + epsilon / num_classes)
    w_miss = jnp.float32(epsilon / num_classes)
    ws = jnp.where(col == tgt, w_hit, w_miss) * shifted

    # Row sums on the (otherwise idle) MXU: (TB, C) @ (C, 128) ones; every
    # output lane holds the row sum, take lane 0.  Row-wise independence means
    # garbage in padded rows never contaminates valid rows.
    ones_c = jnp.ones((c, 128), jnp.float32)
    e_sum = jnp.dot(e, ones_c, preferred_element_type=jnp.float32)[:, :1]
    w_sum = jnp.dot(ws, ones_c, preferred_element_type=jnp.float32)[:, :1]

    lse = jnp.log(e_sum)                                # (TB, 1)
    row_loss = lse - w_sum                              # (TB, 1)

    # Mask rows of the partial trailing block (and tiny-batch padding).
    row = jax.lax.broadcasted_iota(jnp.int32, (tb, 1), 0) + i * block_b
    row_loss = jnp.where(row < batch, row_loss, 0.0)

    out_ref[...] = jnp.broadcast_to(jnp.sum(row_loss), out_ref.shape)


def my_cross_entropy(inputs, targets, *, num_classes, label_smooth=False,
                     learning_weight=False, uncertainty=0.0, block_b=None):
    """JAX wrapper mirroring MyCrossEntropy.forward (forward pass only)."""
    epsilon = 0.1 if label_smooth else 0.0
    b, c = inputs.shape
    assert c == num_classes

    x = inputs                                          # keep caller dtype (bf16 ok)
    t = targets.reshape(b, 1).astype(jnp.int32)

    # Tiny-batch corner: guarantee >= 8 rows so a sublane-aligned block never
    # exceeds the array extent.  (Padded rows are masked in-kernel.)
    b_eff = b
    if b < 8:
        x = jnp.pad(x, ((0, 8 - b), (0, 0)))
        t = jnp.pad(t, ((0, 8 - b), (0, 0)))
        b_eff = 8

    # Tile sizing: dtype-aware, budgeted for the worst-case VMEM (v7x, 64 MiB
    # physical).  Per grid step we hold 2 double-buffered input tiles plus
    # roughly 5 full-tile f32 temporaries (x_f32, shifted, exp, iota/select,
    # weighted product).  ~32 MiB working budget under a 48 MiB scoped limit.
    itemsize = jnp.dtype(inputs.dtype).itemsize
    if block_b is None:
        budget = 32 * 1024 * 1024
        per_row = c * (2 * itemsize + 5 * 4)
        tb = max(8, (budget // per_row) // 8 * 8)
    else:
        tb = max(8, _round_up(block_b, 8))
    # Never larger than the batch (rounded down to sublanes) -> the trailing
    # block is a standard partial block.
    tb = min(tb, max(8, (b_eff // 8) * 8))
    nb = pl.cdiv(b_eff, tb)

    kernel = functools.partial(
        _smooth_ce_kernel,
        epsilon=float(epsilon), num_classes=int(num_classes),
        batch=int(b), block_b=int(tb))

    partials = pl.pallas_call(
        kernel,
        out_shape=jax.ShapeDtypeStruct((nb, 8, 128), jnp.float32),
        grid_spec=pltpu.PrefetchScalarGridSpec(
            num_scalar_prefetch=0,
            grid=(nb,),
            in_specs=[
                # Full class axis per block: last dim == full array dim, so no
                # 128-padding (and no extra HBM round trip) is needed.
                pl.BlockSpec((tb, c), lambda i: (i, 0)),   # logits tile
                pl.BlockSpec((tb, 1), lambda i: (i, 0)),   # targets tile
            ],
            out_specs=pl.BlockSpec((1, 8, 128), lambda i: (i, 0, 0)),
        ),
        compiler_params=pltpu.CompilerParams(
            dimension_semantics=("parallel",),   # megacore / 2-TC sharding
            vmem_limit_bytes=48 * 1024 * 1024,
        ),
    )(x, t)

    loss = jnp.sum(partials[:, 0, 0]) / jnp.float32(b)

    if learning_weight:
        # Scalar glue: exp(-u) * ce + 0.5 * u  (u may be a traced JAX scalar).
        u = jnp.asarray(uncertainty, jnp.float32)
        loss = jnp.exp(-u) * loss + 0.5 * u
    return loss


def _reference(inputs, targets, *, num_classes, label_smooth, learning_weight,
               uncertainty):
    epsilon = 0.1 if label_smooth else 0.0
    log_prob = jax.nn.log_softmax(inputs.astype(jnp.float32), axis=1)
    one_hot = jax.nn.one_hot(targets, num_classes, dtype=jnp.float32)
    soft_hot = (1.0 - epsilon) * one_hot + epsilon / num_classes
    ce = jnp.sum(jnp.mean(-soft_hot * log_prob, axis=0))
    if learning_weight:
        u = jnp.asarray(uncertainty, jnp.float32)
        ce = jnp.exp(-u) * ce + 0.5 * u
    return ce


if __name__ == "__main__":
    key = jax.random.PRNGKey(0)

    cases = [
        # (B, C, label_smooth, learning_weight, dtype) — small demo shapes.
        (8, 32, True, True, jnp.float32),        # original demo config
        (13, 200, True, False, jnp.float32),     # partial trailing batch block
        (16, 128, False, False, jnp.bfloat16),   # bf16 input, no smoothing
    ]

    for (B, C, smooth, lw, dtype) in cases:
        key, k1, k2 = jax.random.split(key, 3)
        logits = jax.random.normal(k1, (B, C), dtype=dtype)
        targets = jax.random.randint(k2, (B,), 0, C, dtype=jnp.int32)
        uncertainty = 0.3 if lw else 0.0   # stand-in for nn.Parameter(0.0)

        out = my_cross_entropy(logits, targets, num_classes=C,
                               label_smooth=smooth, learning_weight=lw,
                               uncertainty=uncertainty)
        out = jax.block_until_ready(out)

        ref = _reference(logits, targets, num_classes=C, label_smooth=smooth,
                         learning_weight=lw, uncertainty=uncertainty)
        assert jnp.allclose(out, ref, rtol=1e-4, atol=1e-4), (B, C, out, ref)

    print("KERNEL_OK")
</pallas_src>

<mosaic_0001>
module attributes {stable_mosaic.version = 11 : i64} {
  func.func @_smooth_ce_kernel(%arg0: i32, %arg1: memref<8x32xf32, #tpu.memory_space<vmem>>, %arg2: memref<8x1xi32, #tpu.memory_space<vmem>>, %arg3: memref<1x8x128xf32, #tpu.memory_space<vmem>>) attributes {dimension_semantics = [#tpu.dimension_semantics<parallel>], iteration_bounds = array<i64: 1>, scalar_prefetch = 0 : i64, scratch_operands = 0 : i64, tpu.core_type = #tpu.core_type<tc>, window_params = [{transform_indices = @transform_0, window_bounds = array<i64: 8, 32>}, {transform_indices = @transform_1, window_bounds = array<i64: 8, 1>}, {transform_indices = @transform_2, window_bounds = array<i64: 1, 8, 128>}]} {
    %c0 = arith.constant 0 : index
    %c0_0 = arith.constant 0 : index
    %0 = vector.load %arg1[%c0, %c0_0] : memref<8x32xf32, #tpu.memory_space<vmem>>, vector<8x32xf32>
    %c0_1 = arith.constant 0 : index
    %c0_2 = arith.constant 0 : index
    %1 = vector.load %arg2[%c0_1, %c0_2] : memref<8x1xi32, #tpu.memory_space<vmem>>, vector<8x1xi32>
    %cst = arith.constant dense<0xFF800000> : vector<8xf32>
    %2 = vector.multi_reduction <maximumf>, %0, %cst [1] : vector<8x32xf32> to vector<8xf32>
    %3 = vector.shape_cast %2 : vector<8xf32> to vector<8x1xf32>
    %4 = vector.broadcast %3 : vector<8x1xf32> to vector<8x32xf32>
    %5 = arith.subf %0, %4 : vector<8x32xf32>
    %6 = math.exp %5 : vector<8x32xf32>
    %7 = tpu.iota {dimensions = array<i32: 1>} : vector<8x32xi32>
    %8 = vector.broadcast %1 : vector<8x1xi32> to vector<8x32xi32>
    %9 = arith.cmpi eq, %7, %8 : vector<8x32xi32>
    %cst_3 = arith.constant 0.903124988 : f32
    %cst_4 = arith.constant 3.125000e-03 : f32
    %10 = vector.broadcast %cst_3 : f32 to vector<8x32xf32>
    %11 = vector.broadcast %cst_4 : f32 to vector<8x32xf32>
    %12 = arith.select %9, %10, %11 : vector<8x32xi1>, vector<8x32xf32>
    %13 = arith.mulf %12, %5 : vector<8x32xf32>
    %cst_5 = arith.constant 1.000000e+00 : f32
    %14 = vector.broadcast %cst_5 : f32 to vector<32x128xf32>
    %cst_6 = arith.constant dense<0.000000e+00> : vector<8x128xf32>
    %15 = tpu.matmul %6, %14, %cst_6 {dimension_numbers = #tpu.dot_dimension_numbers<[1], [0], [0], [1], [0, 0, 1, 1], [], []>} : vector<8x32xf32>, vector<32x128xf32>, vector<8x128xf32> -> vector<8x128xf32>
    %16 = vector.extract_strided_slice %15 {offsets = [0, 0], sizes = [8, 1], strides = [1, 1]} : vector<8x128xf32> to vector<8x1xf32>
    %cst_7 = arith.constant dense<0.000000e+00> : vector<8x128xf32>
    %17 = tpu.matmul %13, %14, %cst_7 {dimension_numbers = #tpu.dot_dimension_numbers<[1], [0], [0], [1], [0, 0, 1, 1], [], []>} : vector<8x32xf32>, vector<32x128xf32>, vector<8x128xf32> -> vector<8x128xf32>
    %18 = vector.extract_strided_slice %17 {offsets = [0, 0], sizes = [8, 1], strides = [1, 1]} : vector<8x128xf32> to vector<8x1xf32>
    %19 = math.log %16 : vector<8x1xf32>
    %20 = arith.subf %19, %18 : vector<8x1xf32>
    %21 = tpu.iota {dimensions = array<i32: 0>} : vector<8x1xi32>
    %c8_i32 = arith.constant 8 : i32
    %22 = arith.muli %arg0, %c8_i32 : i32
    %23 = vector.broadcast %22 : i32 to vector<8x1xi32>
    %24 = arith.addi %21, %23 : vector<8x1xi32>
    %c8_i32_8 = arith.constant 8 : i32
    %25 = vector.broadcast %c8_i32_8 : i32 to vector<8x1xi32>
    %26 = arith.cmpi slt, %24, %25 : vector<8x1xi32>
    %cst_9 = arith.constant 0.000000e+00 : f32
    %27 = vector.broadcast %cst_9 : f32 to vector<8x1xf32>
    %28 = arith.select %26, %20, %27 : vector<8x1xi1>, vector<8x1xf32>
    %29 = vector.shape_cast %28 : vector<8x1xf32> to vector<1x8x1xf32>
    %cst_10 = arith.constant dense<0.000000e+00> : vector<1xf32>
    %30 = vector.multi_reduction <add>, %29, %cst_10 [1, 2] : vector<1x8x1xf32> to vector<1xf32>
    %31 = vector.shape_cast %30 : vector<1xf32> to vector<1x1x1xf32>
    %32 = vector.extract %31[0, 0, 0] : f32 from vector<1x1x1xf32>
    %33 = vector.broadcast %32 : f32 to vector<1x8x128xf32>
    %c0_11 = arith.constant 0 : index
    %c0_12 = arith.constant 0 : index
    %c0_13 = arith.constant 0 : index
    %34 = vector.load %arg3[%c0_11, %c0_12, %c0_13] : memref<1x8x128xf32, #tpu.memory_space<vmem>>, vector<1x8x128xf32>
    tpu.vector_store %arg3[%c0_11, %c0_12, %c0_13], %33 {strides = array<i32>} : memref<1x8x128xf32, #tpu.memory_space<vmem>>, vector<1x8x128xf32>,
    return
  }
  func.func @transform_0(%arg0: i32) -> (i32, i32) {
    %c0_i32 = arith.constant 0 : i32
    %c0_i32_0 = arith.constant 0 : i32
    return %arg0, %c0_i32 : i32, i32
  }
  func.func @transform_1(%arg0: i32) -> (i32, i32) {
    %c0_i32 = arith.constant 0 : i32
    %c0_i32_0 = arith.constant 0 : i32
    return %arg0, %c0_i32 : i32, i32
  }
  func.func @transform_2(%arg0: i32) -> (i32, i32, i32) {
    %c0_i32 = arith.constant 0 : i32
    %c0_i32_0 = arith.constant 0 : i32
    %c0_i32_1 = arith.constant 0 : i32
    return %arg0, %c0_i32, %c0_i32_0 : i32, i32, i32
  }
}

</mosaic_0001>

<bundles_post_ra>
// kernel: tpu_custom_call.1
= control target key start
LH: loop header
LB: loop body
LE: loop exit
PB: predicated region body
PF: predicated region fallthrough
CT: control target
= control target key end

     0   :  { %vm14_vm0 = vcmask 261120   ;;  %s335_s0 = inlined_call_operand.vmem [shape: f32[8,32], index: 0, kind: input, shape index: {}]   ;;  %s336_s1 = inlined_call_operand.vmem [shape: s32[8,1], index: 1, kind: input, shape index: {}]   ;;  %s337_s2 = inlined_call_operand.hbm [shape: f32[1,8,128], index: 2, kind: output, shape index: {}]  }
   0x1   :  { %v12_v0 = vld [vmem:[%s335_s0] sm:$0xff] }
   0x2   :  { %7 = vsyncpa [#allocation3], 0  ;;  %v15_v1 = vsel %vm14_vm0, %v12_v0, -inf  ;;  %v292_v2 = vmov 0   ;;  %v293_v3 = vmov 0.0|0.0   ;;  %v13_v4 = vld [vmem:[%s336_s1] sm:$0xff]  ;;  %v21_v9 = vlaneseq }
   0x3   :  { %263 = vset.pattern.permute.xlu0 %v292_v2  ;;  %250 = vmatprep.subr.bf16.mxu1 %v293_v3  ;;  %v294_v5 = vmov 1.0|1.0   ;;  %vm295_vm1 = vmmov 0   ;;  %v296_v6 = vmov 0.0   ;;  %v297_v13 = vmov 0.003125  }
   0x4   :  { %16 = vmax.xlane.f32.xlu0 %v15_v1  ;;  %246 = vmatprep.subr.bf16.mxu0 %v293_v3  ;;  %v22_v11 = vand.u32 127, %v21_v9  ;;  %vm185_vm3 = vcmask 7168   ;;  %s298_s0 = smov [#allocation2]  }
   0x5   :  { %251 = vmatpush3.bf16.msra.mxu1 %v294_v5  ;;  %247 = vmatpush3.bf16.msra.mxu0 %v294_v5  ;;  %s204_s1 = sshll.u32 %s298_s0, 4  ;;  %s205_s1 = int_to_ptr.vmem [resolvable:$true] %s204_s1 }
   0x6   :  { %252 = vmatprep.subr.bf16.mxu1 %v293_v3  ;;  %248 = vmatprep.subr.bf16.mxu0 %v293_v3  ;;  %s268_s14 = scalar_lea.vmem %s205_s1, 128  ;;  %p273_p1 = scmp.lt.s32.totalorder %s205_s1, %s205_s1 }
   0x7   :  { %243 = vmatprep.mubr.msk.f32.mxu1 %vm295_vm1, %v296_v6  ;;  %232 = vmatprep.mubr.msk.f32.mxu0 %vm295_vm1, %v296_v6  ;;  %p269_p0 = scmp.ne.s32.totalorder %s205_s1, %s268_s14  ;;  %p274_p2 = scmp.lt.s32.totalorder %s268_s14, %s268_s14 }
   0x9   :  { %253 = vmatpush3.bf16.msra.mxu1 %v294_v5  ;;  %249 = vmatpush3.bf16.msra.mxu0 %v294_v5  ;;  %p275_p3 = por %p274_p2, %p273_p1 }
   0xb   :  { %p276_p4 = pnand %p275_p3, %p269_p0 }
  0x1a   :  { %24 = vperm.xlu0 %263, %v13_v4  }
  0x91   :  { %v17_v7 = vpop.xlane.xlu0 %16 }
  0x92   :  { %v18_v8 = vsub.f32 %v12_v0, %v17_v7 }
  0x94   :  { %v19_v10 = vmul.f32 1.442695, %v18_v8 }
  0x96   :  { %264 = vpow2.f32 %v19_v10 }
  0x99   :  { %v25_v12 = vpop.permute.xlu0 %24 }
  0x9a   :  { %vm26_vm2 = vcmp.eq.s32.totalorder %v22_v11, %v25_v12 }
  0x9b   :  { %v27_v14 = vsel %vm26_vm2, 0.903125, %v297_v13 }
  0x9c   :  { %v28_v15 = vmul.f32 %v27_v14, %v18_v8 }
  0x9e   :  { %244 = vmatmul.mubr.msk.f32.vlgmr.msra.gmra.mrb[0].mxu1 %vm14_vm0, %v28_v15 }
  0xa0   :  { %v265_v16 = vpop.eup %264 }
  0xa1   :  { %233 = vmatmul.mubr.msk.f32.vlgmr.msra.gmra.mrb[0].mxu0 %vm14_vm0, %v265_v16 }
 0x171   :  { %v171_v17 = vpop.f32.mrb[0].mxu1 }
 0x172   :  { %v245_v18 = vpop.f32.mrb[1].mxu1 }
 0x174   :  { %v98_v19 = vpop.f32.mrb[0].mxu0 }
 0x175   :  { %266 = vlog2.f32 %v98_v19  ;;  %v234_v20 = vpop.f32.mrb[1].mxu0 }
 0x17f   :  { %v267_v21 = vpop.eup %266 }
 0x180   :  { %v176_v22 = vmul.f32 0.6931472, %v267_v21 }
 0x182   :  { %v177_v23 = vsub.f32 %v176_v22, %v171_v17 }
 0x184   :  { %v186_v24 = vsel %vm185_vm3, %v177_v23, 0.0 }
 0x185   :  { %187 = vadd.xlane.f32.xlu1 %v186_v24 }
 0x212   :  { %v188_v25 = vpop.xlane.xlu1 %187 }
 0x213   :  { %v189_v26 = vrot.slane %v188_v25, 4 }
 0x215   :  { %v190_v27 = vadd.f32 %v189_v26, %v188_v25 }
 0x217   :  { %v191_v28 = vrot.slane %v190_v27, 2 }
 0x219   :  { %v192_v29 = vadd.f32 %v191_v28, %v190_v27 }
 0x21b   :  { %v193_v30 = vrot.slane %v192_v29, 1 }
 0x21d   :  { %v194_v31 = vadd.f32 %v193_v30, %v192_v29 }
 0x21f   :  { %254 = vpush %v194_v31 }
 0x250   :  { %s255_s13 = spop %254 }
 0x251   :  { %v196_v32 = vstv %s255_s13 }
 0x252   :  { %197 = vst [vmem:[#allocation2] sm:$0xff] %v196_v32 }
 0x253   :  { %279 = shalt.err (!%p276_p4)
}
 0x254   :  { %s280_s17 = scalar_lea.hbm %s337_s2, 128 }
 0x255   :  { %p281_p5 = scmp.ne.s32.totalorder %s337_s2, %s280_s17  ;;  %p284_p6 = scmp.lt.u32.totalorder %s280_s17, %s337_s2 }
 0x257   :  { %p286_p7 = pnand %p284_p6, %p281_p5 }
 0x259   :  { %289 = shalt.err (!%p286_p7)
}
 0x25a   :  { %207 = dma.vmem_to_hbm [thread:$0]  %s205_s1, 128, %s337_s2, [#allocation3]  }
 0x25b   :  { %290 = dma.done.wait [#allocation3], 128  }
 0x25c   :  { %291 = vsyncadd [#allocation3], 4294967168 }
 0x25d   :  { %211 = vsyncpa [#allocation3], 1 }

</bundles_post_ra>
